<compile_context>
chip_gen: v7x
topology: tpu7x:2x2x1
jax: 0.10.0
libtpu: 0.0.40
codegen_flags: <defaults>
</compile_context>

<pallas_src>
import math

import jax
import jax.numpy as jnp
from jax.experimental import pallas as pl
from jax.experimental.pallas import tpu as pltpu


def _round_up(x, m):
    return ((x + m - 1) // m) * m


def _largest_chunk(total, cap):
    """Largest multiple of 128 that divides `total` and is <= cap (min 128)."""
    cap = max(128, min(cap, total))
    c = (cap // 128) * 128
    while c > 128 and total % c != 0:
        c -= 128
    return max(128, c)


def _feature_projection_kernel(x_ref, w1_ref, b1_ref, w2_ref, b2_ref, o_ref,
                               acc_ref):
    """Grid = (row tiles, hidden chunks).  For one (row tile, hidden chunk):
         acc += gelu(x @ W1[:, chunk] + b1[chunk]) @ W2[chunk, :]
       finalized with + b2 and a cast/store on the last hidden chunk."""
    h_idx = pl.program_id(1)

    @pl.when(h_idx == 0)
    def _():
        acc_ref[...] = jnp.zeros_like(acc_ref)

    # linear1 on this hidden chunk — native-dtype operands, f32 MXU accumulation
    h = jnp.dot(x_ref[...], w1_ref[...], preferred_element_type=jnp.float32)
    h = h + b1_ref[...].astype(jnp.float32)            # (tm, th) + (1, th)

    # exact (erf-based) GELU in f32, matching torch.nn.GELU() default
    h = 0.5 * h * (1.0 + jax.lax.erf(h * (1.0 / math.sqrt(2.0))))

    # linear2 contribution of this hidden chunk
    acc_ref[...] += jnp.dot(h.astype(w2_ref.dtype), w2_ref[...],
                            preferred_element_type=jnp.float32)

    @pl.when(h_idx == pl.num_programs(1) - 1)
    def _():
        o_ref[...] = (acc_ref[...]
                      + b2_ref[...].astype(jnp.float32)).astype(o_ref.dtype)


def feature_projection(x, w1, b1, w2, b2, *, tm=1024, hidden_chunk=512):
    """x: (batch, seq, input_dim) -> (batch, seq, output_dim)."""
    batch, seq, d_in = x.shape
    hidden = w1.shape[1]
    d_out = w2.shape[1]
    M = batch * seq

    x_item = jnp.dtype(x.dtype).itemsize
    w_item = jnp.dtype(w1.dtype).itemsize

    # Generation-aware VMEM budget: one number for both the tile-shrink loop
    # and the declared compiler limit.
    try:
        vmem_cap = pltpu.get_tpu_info().vmem_capacity_bytes
    except Exception:
        vmem_cap = 64 * 1024 * 1024   # conservative fallback (v7x-sized)
    budget = min(int(vmem_cap * 0.75), 96 * 1024 * 1024)
    budget = max(budget, 32 * 1024 * 1024)

    # Lane-dense padding of the hidden axis (weights only; gelu(0)=0 so the
    # padded columns contribute exactly zero) and of d_out only if needed.
    Hp = _round_up(hidden, 128)
    Np = _round_up(d_out, 128)

    # Row tile: large, 8-row aligned, clamped to the problem; split into >=2
    # grid steps when M is big enough (v7x megacore; negligible cost on 1-TC).
    tm_eff = max(8, min(tm, _round_up(M, 8)))
    if M >= 512:
        tm_eff = min(tm_eff, _round_up(pl.cdiv(M, 2), 256))
    tm_eff = _round_up(tm_eff, 8)
    tm_floor = min(256, tm_eff)

    # Hidden chunk: multiple of 128 that divides Hp.
    th = _largest_chunk(Hp, hidden_chunk)

    def _vmem_bytes(t, c):
        x_b = 2 * t * max(d_in, 128) * x_item        # x tile (double-buffered)
        w1_b = 2 * max(d_in, 8) * c * w_item         # W1 chunk
        b1_b = 2 * 8 * c * w_item                    # b1 chunk (sublane-padded)
        w2_b = 2 * c * Np * w_item                   # W2 chunk
        b2_b = 2 * 8 * Np * w_item                   # b2
        o_b = 2 * t * Np * x_item                    # output tile
        acc_b = t * Np * 4                           # f32 accumulator scratch
        h_b = t * c * (4 + w_item)                   # f32 hidden chunk + cast copy
        return x_b + w1_b + b1_b + w2_b + b2_b + o_b + acc_b + h_b

    # Shrink the hidden chunk first (keeps the MXU-feeding row tile large),
    # then the row tile, never below a 256-row floor.
    while _vmem_bytes(tm_eff, th) > budget:
        if th > 128:
            th = _largest_chunk(Hp, th - 128)
        elif tm_eff > tm_floor:
            tm_eff = max(tm_floor, _round_up(tm_eff // 2, 8))
        else:
            break

    grid_m = pl.cdiv(M, tm_eff)
    grid_h = Hp // th

    # Pad weights / biases only — no extra HBM pass over the activations.
    w1p = w1 if Hp == hidden else jnp.pad(w1, ((0, 0), (0, Hp - hidden)))
    b1p = (b1 if Hp == hidden else jnp.pad(b1, (0, Hp - hidden))).reshape(1, Hp)
    w2p = w2
    if Hp != hidden or Np != d_out:
        w2p = jnp.pad(w2, ((0, Hp - hidden), (0, Np - d_out)))
    b2p = (b2 if Np == d_out else jnp.pad(b2, (0, Np - d_out))).reshape(1, Np)

    # Activations: reshape only (free); ragged last row tile is masked by Pallas.
    x2d = x.reshape(M, d_in)

    out2d = pl.pallas_call(
        _feature_projection_kernel,
        out_shape=jax.ShapeDtypeStruct((M, Np), x.dtype),
        grid_spec=pltpu.PrefetchScalarGridSpec(
            num_scalar_prefetch=0,
            grid=(grid_m, grid_h),           # hidden (reduction) axis last
            in_specs=[
                pl.BlockSpec((tm_eff, d_in), lambda i, h: (i, 0)),  # x row tile
                pl.BlockSpec((d_in, th), lambda i, h: (0, h)),      # W1 chunk
                pl.BlockSpec((1, th), lambda i, h: (0, h)),         # b1 chunk
                pl.BlockSpec((th, Np), lambda i, h: (h, 0)),        # W2 chunk
                pl.BlockSpec((1, Np), lambda i, h: (0, 0)),         # b2
            ],
            out_specs=pl.BlockSpec((tm_eff, Np), lambda i, h: (i, 0)),
            scratch_shapes=[pltpu.VMEM((tm_eff, Np), jnp.float32)],
        ),
        compiler_params=pltpu.CompilerParams(
            dimension_semantics=("parallel", "arbitrary"),
            vmem_limit_bytes=budget,
        ),
    )(x2d, w1p, b1p, w2p, b2p)

    if Np != d_out:
        out2d = out2d[:, :d_out]
    return out2d.reshape(batch, seq, d_out)


def _reference(x, w1, b1, w2, b2):
    h = jnp.dot(x, w1) + b1
    h = jax.nn.gelu(h, approximate=False)
    return jnp.dot(h, w2) + b2


if __name__ == "__main__":
    # Small, deterministic problem sizes consistent with the module
    # (d_in and d_out deliberately non-multiples of 128 to exercise padding).
    batch, seq = 2, 8
    input_dim, hidden_dims, output_dim = 64, 256, 32

    key = jax.random.PRNGKey(0)
    kx, kw1, kb1, kw2, kb2 = jax.random.split(key, 5)

    x = jax.random.normal(kx, (batch, seq, input_dim), dtype=jnp.float32)

    # Deterministic parameter init (PyTorch-Linear-like uniform bounds).
    bound1 = 1.0 / math.sqrt(input_dim)
    w1 = jax.random.uniform(kw1, (input_dim, hidden_dims), jnp.float32,
                            -bound1, bound1)
    b1 = jax.random.uniform(kb1, (hidden_dims,), jnp.float32, -bound1, bound1)

    bound2 = 1.0 / math.sqrt(hidden_dims)
    w2 = jax.random.uniform(kw2, (hidden_dims, output_dim), jnp.float32,
                            -bound2, bound2)
    b2 = jax.random.uniform(kb2, (output_dim,), jnp.float32, -bound2, bound2)

    out = feature_projection(x, w1, b1, w2, b2)
    out = jax.block_until_ready(out)

    ref = _reference(x, w1, b1, w2, b2)
    assert out.shape == (batch, seq, output_dim)
    assert jnp.allclose(out, ref, atol=2e-5, rtol=2e-5)

    print("KERNEL_OK")
</pallas_src>

<mosaic_0001>
module attributes {stable_mosaic.version = 11 : i64} {
  func.func @_feature_projection_kernel(%arg0: i32, %arg1: i32, %arg2: memref<16x64xf32, #tpu.memory_space<vmem>>, %arg3: memref<64x256xf32, #tpu.memory_space<vmem>>, %arg4: memref<1x256xf32, #tpu.memory_space<vmem>>, %arg5: memref<256x128xf32, #tpu.memory_space<vmem>>, %arg6: memref<1x128xf32, #tpu.memory_space<vmem>>, %arg7: memref<16x128xf32, #tpu.memory_space<vmem>>, %arg8: memref<16x128xf32, #tpu.memory_space<vmem>>) attributes {dimension_semantics = [#tpu.dimension_semantics<parallel>, #tpu.dimension_semantics<arbitrary>], iteration_bounds = array<i64: 1, 1>, scalar_prefetch = 0 : i64, scratch_operands = 1 : i64, tpu.core_type = #tpu.core_type<tc>, window_params = [{transform_indices = @transform_0, window_bounds = array<i64: 16, 64>}, {transform_indices = @transform_1, window_bounds = array<i64: 64, 256>}, {transform_indices = @transform_2, window_bounds = array<i64: 1, 256>}, {transform_indices = @transform_3, window_bounds = array<i64: 256, 128>}, {pipeline_mode = #tpu.pipeline_mode<synchronous>, transform_indices = @transform_4, window_bounds = array<i64: 1, 128>}, {transform_indices = @transform_5, window_bounds = array<i64: 16, 128>}]} {
    %c0_i32 = arith.constant 0 : i32
    %0 = arith.cmpi eq, %arg1, %c0_i32 : i32
    %1 = arith.extui %0 : i1 to i32
    %c0_i32_0 = arith.constant 0 : i32
    %2 = arith.cmpi ne, %1, %c0_i32_0 : i32
    scf.if %2 {
      %cst_18 = arith.constant 0.000000e+00 : f32
      %25 = vector.broadcast %cst_18 : f32 to vector<16x128xf32>
      %c0_19 = arith.constant 0 : index
      %c0_20 = arith.constant 0 : index
      %26 = vector.load %arg8[%c0_19, %c0_20] : memref<16x128xf32, #tpu.memory_space<vmem>>, vector<16x128xf32>
      tpu.vector_store %arg8[%c0_19, %c0_20], %25 {strides = array<i32>} : memref<16x128xf32, #tpu.memory_space<vmem>>, vector<16x128xf32>,
    } else {
    }
    %c0 = arith.constant 0 : index
    %c0_1 = arith.constant 0 : index
    %3 = vector.load %arg2[%c0, %c0_1] : memref<16x64xf32, #tpu.memory_space<vmem>>, vector<16x64xf32>
    %c0_2 = arith.constant 0 : index
    %c0_3 = arith.constant 0 : index
    %4 = vector.load %arg3[%c0_2, %c0_3] : memref<64x256xf32, #tpu.memory_space<vmem>>, vector<64x256xf32>
    %cst = arith.constant dense<0.000000e+00> : vector<16x256xf32>
    %5 = tpu.matmul %3, %4, %cst {dimension_numbers = #tpu.dot_dimension_numbers<[1], [0], [0], [1], [0, 0, 1, 1], [], []>} : vector<16x64xf32>, vector<64x256xf32>, vector<16x256xf32> -> vector<16x256xf32>
    %c0_4 = arith.constant 0 : index
    %c0_5 = arith.constant 0 : index
    %6 = vector.load %arg4[%c0_4, %c0_5] : memref<1x256xf32, #tpu.memory_space<vmem>>, vector<1x256xf32>
    %7 = vector.broadcast %6 : vector<1x256xf32> to vector<16x256xf32>
    %8 = arith.addf %5, %7 : vector<16x256xf32>
    %cst_6 = arith.constant 5.000000e-01 : f32
    %9 = vector.broadcast %cst_6 : f32 to vector<16x256xf32>
    %10 = arith.mulf %9, %8 : vector<16x256xf32>
    %cst_7 = arith.constant 0.707106769 : f32
    %11 = vector.broadcast %cst_7 : f32 to vector<16x256xf32>
    %12 = arith.mulf %8, %11 : vector<16x256xf32>
    %13 = math.erf %12 : vector<16x256xf32>
    %cst_8 = arith.constant 1.000000e+00 : f32
    %14 = vector.broadcast %cst_8 : f32 to vector<16x256xf32>
    %15 = arith.addf %14, %13 : vector<16x256xf32>
    %16 = arith.mulf %10, %15 : vector<16x256xf32>
    %c0_9 = arith.constant 0 : index
    %c0_10 = arith.constant 0 : index
    %17 = vector.load %arg8[%c0_9, %c0_10] : memref<16x128xf32, #tpu.memory_space<vmem>>, vector<16x128xf32>
    %c0_11 = arith.constant 0 : index
    %c0_12 = arith.constant 0 : index
    %18 = vector.load %arg5[%c0_11, %c0_12] : memref<256x128xf32, #tpu.memory_space<vmem>>, vector<256x128xf32>
    %cst_13 = arith.constant dense<0.000000e+00> : vector<16x128xf32>
    %19 = tpu.matmul %16, %18, %cst_13 {dimension_numbers = #tpu.dot_dimension_numbers<[1], [0], [0], [1], [0, 0, 1, 1], [], []>} : vector<16x256xf32>, vector<256x128xf32>, vector<16x128xf32> -> vector<16x128xf32>
    %20 = arith.addf %17, %19 : vector<16x128xf32>
    %c0_14 = arith.constant 0 : index
    %c0_15 = arith.constant 0 : index
    %21 = vector.load %arg8[%c0_14, %c0_15] : memref<16x128xf32, #tpu.memory_space<vmem>>, vector<16x128xf32>
    tpu.vector_store %arg8[%c0_14, %c0_15], %20 {strides = array<i32>} : memref<16x128xf32, #tpu.memory_space<vmem>>, vector<16x128xf32>,
    %c0_i32_16 = arith.constant 0 : i32
    %22 = arith.cmpi eq, %arg1, %c0_i32_16 : i32
    %23 = arith.extui %22 : i1 to i32
    %c0_i32_17 = arith.constant 0 : i32
    %24 = arith.cmpi ne, %23, %c0_i32_17 : i32
    scf.if %24 {
      %c0_18 = arith.constant 0 : index
      %c0_19 = arith.constant 0 : index
      %25 = vector.load %arg8[%c0_18, %c0_19] : memref<16x128xf32, #tpu.memory_space<vmem>>, vector<16x128xf32>
      %c0_20 = arith.constant 0 : index
      %c0_21 = arith.constant 0 : index
      %26 = vector.load %arg6[%c0_20, %c0_21] : memref<1x128xf32, #tpu.memory_space<vmem>>, vector<1x128xf32>
      %27 = vector.broadcast %26 : vector<1x128xf32> to vector<16x128xf32>
      %28 = arith.addf %25, %27 : vector<16x128xf32>
      %c0_22 = arith.constant 0 : index
      %c0_23 = arith.constant 0 : index
      %29 = vector.load %arg7[%c0_22, %c0_23] : memref<16x128xf32, #tpu.memory_space<vmem>>, vector<16x128xf32>
      tpu.vector_store %arg7[%c0_22, %c0_23], %28 {strides = array<i32>} : memref<16x128xf32, #tpu.memory_space<vmem>>, vector<16x128xf32>,
    } else {
    }
    return
  }
  func.func @transform_0(%arg0: i32, %arg1: i32) -> (i32, i32) {
    %c0_i32 = arith.constant 0 : i32
    %c0_i32_0 = arith.constant 0 : i32
    return %arg0, %c0_i32 : i32, i32
  }
  func.func @transform_1(%arg0: i32, %arg1: i32) -> (i32, i32) {
    %c0_i32 = arith.constant 0 : i32
    %c0_i32_0 = arith.constant 0 : i32
    return %c0_i32, %arg1 : i32, i32
  }
  func.func @transform_2(%arg0: i32, %arg1: i32) -> (i32, i32) {
    %c0_i32 = arith.constant 0 : i32
    %c0_i32_0 = arith.constant 0 : i32
    return %c0_i32, %arg1 : i32, i32
  }
  func.func @transform_3(%arg0: i32, %arg1: i32) -> (i32, i32) {
    %c0_i32 = arith.constant 0 : i32
    %c0_i32_0 = arith.constant 0 : i32
    return %arg1, %c0_i32 : i32, i32
  }
  func.func @transform_4(%arg0: i32, %arg1: i32) -> (i32, i32) {
    %c0_i32 = arith.constant 0 : i32
    %c0_i32_0 = arith.constant 0 : i32
    %c0_i32_1 = arith.constant 0 : i32
    return %c0_i32, %c0_i32_0 : i32, i32
  }
  func.func @transform_5(%arg0: i32, %arg1: i32) -> (i32, i32) {
    %c0_i32 = arith.constant 0 : i32
    %c0_i32_0 = arith.constant 0 : i32
    return %arg0, %c0_i32 : i32, i32
  }
}

</mosaic_0001>

<bundles_post_ra>
// kernel: tpu_custom_call.1
= control target key start
LH: loop header
LB: loop body
LE: loop exit
PB: predicated region body
PF: predicated region fallthrough
CT: control target
= control target key end

     0   :  { %10 = vsyncpa [#allocation4], 0  ;;  %s651_s0 = inlined_call_operand.hbm [shape: f32[16,64], index: 0, kind: input, shape index: {}]   ;;  %s652_s1 = inlined_call_operand.hbm [shape: f32[64,256], index: 1, kind: input, shape index: {}]   ;;  %s653_s2 = inlined_call_operand.vmem [shape: f32[1,256], index: 2, kind: input, shape index: {}]   ;;  %s654_s3 = inlined_call_operand.hbm [shape: f32[256,128], index: 3, kind: input, shape index: {}]   ;;  %s655_s4 = inlined_call_operand.vmem [shape: f32[1,128], index: 4, kind: input, shape index: {}]   ;;  %s656_s5 = inlined_call_operand.hbm [shape: f32[16,128], index: 5, kind: output, shape index: {}]  }
   0x1   :  { %11 = vsyncpa [#allocation7], 0 }
   0x2   :  { %12 = vsyncpa [#allocation5], 0  ;;  %s549_s18 = smov [#allocation6]   ;;  %s455_s22 = scalar_lea.hbm %s652_s1, 2048 }
   0x3   :  { %s30_s19 = sshll.u32 %s549_s18, 4  ;;  %p456_p0 = scmp.ne.s32.totalorder %s652_s1, %s455_s22  ;;  %s31_s19 = int_to_ptr.vmem [resolvable:$true] %s30_s19 }
   0x4   :  { %p459_p1 = scmp.lt.u32.totalorder %s455_s22, %s652_s1 }
   0x6   :  { %p461_p2 = pnand %p459_p1, %p456_p0 }
   0x8   :  { %464 = shalt.err (!%p461_p2)
}
   0x9   :  { %s465_s27 = scalar_lea.vmem %s31_s19, 2048  ;;  %p470_p4 = scmp.lt.s32.totalorder %s31_s19, %s31_s19 }
   0xa   :  { %p466_p3 = scmp.ne.s32.totalorder %s31_s19, %s465_s27  ;;  %p471_p5 = scmp.lt.s32.totalorder %s465_s27, %s465_s27 }
   0xc   :  { %p472_p6 = por %p471_p5, %p470_p4 }
   0xe   :  { %p473_p7 = pnand %p472_p6, %p466_p3 }
  0x10   :  { %476 = shalt.err (!%p473_p7)
}
  0x11   :  { %s550_s28 = smov 256   ;;  %s551_s29 = smov 16  }
  0x12   :  { %36 = dma.hbm_to_vmem [thread:$0]  %s652_s1, 2048, %s31_s19, [#allocation7], %s550_s28, %s550_s28, %s551_s29  }
  0x13   :  { %s552_s7 = smov [#allocation3]   ;;  %s477_s11 = scalar_lea.hbm %s651_s0, 256 }
  0x14   :  { %s18_s8 = sshll.u32 %s552_s7, 4  ;;  %p478_p8 = scmp.ne.s32.totalorder %s651_s0, %s477_s11  ;;  %s19_s8 = int_to_ptr.vmem [resolvable:$true] %s18_s8 }
  0x15   :  { %p481_p9 = scmp.lt.u32.totalorder %s477_s11, %s651_s0 }
  0x17   :  { %p483_p10 = pnand %p481_p9, %p478_p8 }
  0x19   :  { %486 = shalt.err (!%p483_p10)
}
  0x1a   :  { %s487_s16 = scalar_lea.vmem %s19_s8, 256  ;;  %p492_p12 = scmp.lt.s32.totalorder %s19_s8, %s19_s8 }
  0x1b   :  { %p488_p11 = scmp.ne.s32.totalorder %s19_s8, %s487_s16  ;;  %p493_p13 = scmp.lt.s32.totalorder %s487_s16, %s487_s16 }
  0x1d   :  { %p494_p0 = por %p493_p13, %p492_p12 }
  0x1f   :  { %p495_p1 = pnand %p494_p0, %p488_p11 }
  0x21   :  { %498 = shalt.err (!%p495_p1)
}
  0x22   :  { %s553_s1 = smov 128   ;;  %s554_s17 = smov 8  }
  0x23   :  { %24 = dma.hbm_to_vmem [thread:$0]  %s651_s0, 256, %s19_s8, [#allocation4], %s553_s1, %s553_s1, %s554_s17  }
  0x24   :  { %s555_s20 = smov [#allocation8]   ;;  %s499_s24 = scalar_lea.hbm %s654_s3, 4096 }
  0x25   :  { %s44_s21 = sshll.u32 %s555_s20, 4  ;;  %p500_p2 = scmp.ne.s32.totalorder %s654_s3, %s499_s24  ;;  %s45_s21 = int_to_ptr.vmem [resolvable:$true] %s44_s21 }
  0x26   :  { %p503_p3 = scmp.lt.u32.totalorder %s499_s24, %s654_s3 }
  0x28   :  { %p505_p4 = pnand %p503_p3, %p500_p2 }
  0x2a   :  { %508 = shalt.err (!%p505_p4)
}
  0x2b   :  { %s509_s29 = scalar_lea.vmem %s45_s21, 4096  ;;  %p514_p6 = scmp.lt.s32.totalorder %s45_s21, %s45_s21 }
  0x2c   :  { %p510_p5 = scmp.ne.s32.totalorder %s45_s21, %s509_s29  ;;  %p515_p7 = scmp.lt.s32.totalorder %s509_s29, %s509_s29 }
  0x2e   :  { %p516_p8 = por %p515_p7, %p514_p6 }
  0x30   :  { %p517_p9 = pnand %p516_p8, %p510_p5 }
  0x32   :  { %520 = shalt.err (!%p517_p9)
}
  0x33   :  { %50 = dma.hbm_to_vmem [thread:$0]  %s654_s3, 4096, %s45_s21, [#allocation7], %s553_s1, %s553_s1, %s554_s17  }
  0x34   :  { %543 = dma.done.wait [#allocation4], 256  }
  0x35   :  { %544 = vsyncadd [#allocation4], 4294967040 }
  0x36   :  { %545 = dma.done.wait [#allocation7], 6144  }
  0x37   :  { %546 = vsyncadd [#allocation7], 4294961152  ;;  %v556_v0 = vmov 0.0   ;;  %v71_v1 = vld [vmem:[#allocation6 + $0x8] sm:$0xff]  ;;  %v73_v2 = vld [vmem:[#allocation6 + $0x18] sm:$0xff]  ;;  %vm98_vm0 = vcmask 523264  }
  0x38   :  { %169 = vmatprep.mubr.f32.mxu0 %v556_v0  ;;  %v70_v3 = vld [vmem:[#allocation6] sm:$0xff]  ;;  %v390_v4 = vpack.c.bf16 %v73_v2, %v71_v1  ;;  %v72_v5 = vld [vmem:[#allocation6 + $0x10] sm:$0xff]  ;;  %v75_v6 = vld [vmem:[#allocation6 + $0x28] sm:$0xff]  ;;  %s557_s8 = smov [#allocation9]  }
  0x39   :  { %v77_v7 = vld [vmem:[#allocation6 + $0x38] sm:$0xff]  ;;  %v392_v8 = vpack.c.bf16 %v72_v5, %v70_v3  ;;  %v74_v10 = vld [vmem:[#allocation6 + $0x20] sm:$0xff]  ;;  %v76_v11 = vld [vmem:[#allocation6 + $0x30] sm:$0xff]  ;;  %s336_s9 = sshll.u32 %s557_s8, 4  ;;  %s337_s9 = int_to_ptr.vmem [resolvable:$true] %s336_s9 }
  0x3a   :  { %v394_v9 = vpack.c.bf16 %v77_v7, %v75_v6  ;;  %v79_v12 = vld [vmem:[#allocation6 + $0x48] sm:$0xff]  ;;  %391 = vmatprep.subr.bf16.mxu0 %v390_v4  ;;  %v81_v13 = vld [vmem:[#allocation6 + $0x58] sm:$0xff]  ;;  %v396_v14 = vpack.c.bf16 %v76_v11, %v74_v10  ;;  %v78_v15 = vld [vmem:[#allocation6 + $0x40] sm:$0xff]  ;;  %v88_v11 = vlaneseq  ;;  %s521_s10 = scalar_lea.vmem %s337_s9, 256  ;;  %p526_p11 = scmp.lt.s32.totalorder %s337_s9, %s337_s9 }
  0x3b   :  { %393 = vmatpush1.bf16.msra.mxu0 %v392_v8  ;;  %v398_v16 = vpack.c.bf16 %v81_v13, %v79_v12  ;;  %v80_v17 = vld [vmem:[#allocation6 + $0x50] sm:$0xff]  ;;  %v83_v18 = vld [vmem:[#allocation6 + $0x68] sm:$0xff]  ;;  %v85_v19 = vld [vmem:[#allocation6 + $0x78] sm:$0xff]  ;;  %p522_p10 = scmp.ne.s32.totalorder %s337_s9, %s521_s10  ;;  %p527_p12 = scmp.lt.s32.totalorder %s521_s10, %s521_s10 }
  0x3c   :  { %395 = vmatprep.subr.bf16.mxu0 %v394_v9  ;;  %v220_v20 = vld [vmem:[#allocation8 + $0x80] sm:$0xff]  ;;  %v221_v21 = vld [vmem:[#allocation8 + $0x88] sm:$0xff]  ;;  %v222_v25 = vld [vmem:[#allocation8 + $0x90] sm:$0xff]  ;;  %v400_v27 = vpack.c.bf16 %v80_v17, %v78_v15  ;;  %v402_v33 = vpack.c.bf16 %v85_v19, %v83_v18  ;;  %v89_v12 = vshrl.u32 %v88_v11, 7 }
  0x3d   :  { %v204_v22 = vld [vmem:[#allocation8] sm:$0xff]  ;;  %v406_v23 = vpack.c.bf16 %v221_v21, %v220_v20  ;;  %v205_v24 = vld [vmem:[#allocation8 + $0x8] sm:$0xff]  ;;  %v223_v26 = vld [vmem:[#allocation8 + $0x98] sm:$0xff]  ;;  %p528_p13 = por %p527_p12, %p526_p11 }
  0x3e   :  { %v408_v28 = vpack.c.bf16 %v205_v24, %v204_v22  ;;  %v410_v29 = vpack.c.bf16 %v223_v26, %v222_v25  ;;  %v206_v30 = vld [vmem:[#allocation8 + $0x10] sm:$0xff]  ;;  %v207_v31 = vld [vmem:[#allocation8 + $0x18] sm:$0xff]  ;;  %v224_v32 = vld [vmem:[#allocation8 + $0xa0] sm:$0xff]  ;;  %v90_v13 = vsub.s32 0, %v89_v12  ;;  %v94_v15 = vsub.s32 1, %v89_v12 }
  0x3f   :  { %397 = vmatpush1.bf16.msra.mxu0 %v396_v14  ;;  %v82_v34 = vld [vmem:[#allocation6 + $0x60] sm:$0xff]  ;;  %v84_v35 = vld [vmem:[#allocation6 + $0x70] sm:$0xff]  ;;  %407 = vmatprep.subr.bf16.mxu1 %v406_v23  ;;  %v225_v36 = vld [vmem:[#allocation8 + $0xa8] sm:$0xff]  ;;  %v412_v37 = vpack.c.bf16 %v207_v31, %v206_v30  ;;  %p529_p0 = pnand %p528_p13, %p522_p10 }
  0x40   :  { %399 = vmatprep.subr.bf16.mxu0 %v398_v16  ;;  %409 = vmatpush3.bf16.msra.mxu1 %v408_v28  ;;  %v414_v38 = vpack.c.bf16 %v225_v36, %v224_v32  ;;  %v208_v39 = vld [vmem:[#allocation8 + $0x20] sm:$0xff]  ;;  %v209_v40 = vld [vmem:[#allocation8 + $0x28] sm:$0xff]  ;;  %v404_v41 = vpack.c.bf16 %v84_v35, %v82_v34  ;;  %v68_v43 = vld [vmem:[#allocation3] sm:$0xff] }
  0x41   :  { %411 = vmatprep.subr.bf16.mxu1 %v410_v29  ;;  %v416_v42 = vpack.c.bf16 %v209_v40, %v208_v39  ;;  %v69_v44 = vld [vmem:[#allocation3 + $0x8] sm:$0xff]  ;;  %v226_v45 = vld [vmem:[#allocation8 + $0xb0] sm:$0xff]  ;;  %v228_v51 = vld [vmem:[#allocation8 + $0xc0] sm:$0xff] }
  0x42   :  { %v227_v46 = vld [vmem:[#allocation8 + $0xb8] sm:$0xff]  ;;  %v210_v48 = vld [vmem:[#allocation8 + $0x30] sm:$0xff]  ;;  %v229_v52 = vld [vmem:[#allocation8 + $0xc8] sm:$0xff] }
  0x43   :  { %401 = vmatpush1.bf16.msra.mxu0 %v400_v27  ;;  %v418_v47 = vpack.c.bf16 %v227_v46, %v226_v45  ;;  %v211_v49 = vld [vmem:[#allocation8 + $0x38] sm:$0xff]  ;;  %v422_v53 = vpack.c.bf16 %v229_v52, %v228_v51  ;;  %v212_v54 = vld [vmem:[#allocation8 + $0x40] sm:$0xff]  ;;  %v213_v55 = vld [vmem:[#allocation8 + $0x48] sm:$0xff] }
  0x44   :  { %403 = vmatprep.subr.bf16.mxu0 %v402_v33  ;;  %413 = vmatpush3.bf16.msra.mxu1 %v412_v37  ;;  %v420_v50 = vpack.c.bf16 %v211_v49, %v210_v48  ;;  %v424_v56 = vpack.c.bf16 %v213_v55, %v212_v54  ;;  %v230_v57 = vld [vmem:[#allocation8 + $0xd0] sm:$0xff]  ;;  %v231_v58 = vld [vmem:[#allocation8 + $0xd8] sm:$0xff]  ;;  %v232_v63 = vld [vmem:[#allocation8 + $0xe0] sm:$0xff] }
  0x45   :  { %415 = vmatprep.subr.bf16.mxu1 %v414_v38  ;;  %v426_v59 = vpack.c.bf16 %v231_v58, %v230_v57  ;;  %v214_v60 = vld [vmem:[#allocation8 + $0x50] sm:$0xff]  ;;  %v215_v61 = vld [vmem:[#allocation8 + $0x58] sm:$0xff]  ;;  %v216_v2 = vld [vmem:[#allocation8 + $0x60] sm:$0xff] }
  0x46   :  { %v428_v62 = vpack.c.bf16 %v215_v61, %v214_v60  ;;  %v217_v3 = vld [vmem:[#allocation8 + $0x68] sm:$0xff]  ;;  %v234_v5 = vld [vmem:[#allocation8 + $0xf0] sm:$0xff]  ;;  %v235_v6 = vld [vmem:[#allocation8 + $0xf8] sm:$0xff] }
  0x47   :  { %405 = vmatpush1.bf16.msra.mxu0 %v404_v41  ;;  %v432_v4 = vpack.c.bf16 %v217_v3, %v216_v2  ;;  %v434_v7 = vpack.c.bf16 %v235_v6, %v234_v5  ;;  %v218_v8 = vld [vmem:[#allocation8 + $0x70] sm:$0xff]  ;;  %v219_v9 = vld [vmem:[#allocation8 + $0x78] sm:$0xff] }
  0x48   :  { %417 = vmatpush3.bf16.msra.mxu1 %v416_v42  ;;  %v436_v10 = vpack.c.bf16 %v219_v9, %v218_v8  ;;  %v86_v14 = vld [vmem:[%s653_s2] sm:$0x3] }
  0x49   :  { %419 = vmatprep.subr.bf16.mxu1 %v418_v47  ;;  %v91_v16 = vrot.slane %v86_v14, %v90_v13  ;;  %v95_v17 = vrot.slane %v86_v14, %v94_v15  ;;  %v351_v48 = vld [vmem:[%s655_s4] ss:$0 sm:$0xff] }
  0x4a   :  { %349 = vmatmul.mubr.msk.f32.vlgmr.msra.gmra.mrb[0].mxu0 %vm98_vm0, %v68_v43 }
  0x4b   :  { %175 = vmatprep.mubr.f32.mxu0 %v556_v0  ;;  %v233_v0 = vld [vmem:[#allocation8 + $0xe8] sm:$0xff] }
  0x4c   :  { %421 = vmatpush3.bf16.msra.mxu1 %v420_v50  ;;  %v430_v1 = vpack.c.bf16 %v233_v0, %v232_v63 }
  0x4d   :  { %423 = vmatprep.subr.bf16.mxu1 %v422_v53 }
  0x4e   :  { %350 = vmatmul.mubr.msk.f32.gmra.mrb[2].mxu0 %vm98_vm0, %v69_v44 }
  0x50   :  { %425 = vmatpush3.bf16.msra.mxu1 %v424_v56 }
  0x51   :  { %427 = vmatprep.subr.bf16.mxu1 %v426_v59 }
  0x54   :  { %429 = vmatpush3.bf16.msra.mxu1 %v428_v62 }
  0x55   :  { %431 = vmatprep.subr.bf16.mxu1 %v430_v1 }
  0x58   :  { %433 = vmatpush3.bf16.msra.mxu1 %v432_v4 }
  0x59   :  { %435 = vmatprep.subr.bf16.mxu1 %v434_v7 }
  0x5c   :  { %437 = vmatpush3.bf16.msra.mxu1 %v436_v10 }
 0x11d   :  { %v171_v18 = vpop.f32.mrb[0].mxu0 }
 0x11e   :  { %v172_v19 = vadd.f32 %v171_v18, %v91_v16  ;;  %v173_v20 = vpop.f32.mrb[1].mxu0 }
 0x11f   :  { %v174_v21 = vadd.f32 %v173_v20, %v95_v17 }
 0x120   :  { %v186_v22 = vmul.f32 0.70710677, %v172_v19  ;;  %v182_v35 = vmul.f32 0.5, %v172_v19 }
 0x121   :  { %v187_v23 = vmul.f32 0.70710677, %v174_v21  ;;  %v177_v24 = vpop.f32.mrb[2].mxu0  ;;  %v183_v33 = vmul.f32 0.5, %v174_v21 }
 0x122   :  { %447 = verf.f32 %v186_v22  ;;  %v178_v25 = vadd.f32 %v177_v24, %v91_v16  ;;  %v179_v26 = vpop.f32.mrb[3].mxu0 }
 0x123   :  { %449 = verf.f32 %v187_v23  ;;  %v180_v27 = vadd.f32 %v179_v26, %v95_v17 }
 0x124   :  { %v188_v28 = vmul.f32 0.70710677, %v178_v25  ;;  %v184_v43 = vmul.f32 0.5, %v178_v25 }
 0x125   :  { %v189_v29 = vmul.f32 0.70710677, %v180_v27  ;;  %v185_v41 = vmul.f32 0.5, %v180_v27 }
 0x126   :  { %451 = verf.f32 %v188_v28 }
 0x127   :  { %453 = verf.f32 %v189_v29 }
 0x12c   :  { %v448_v30 = vpop.eup %447 }
 0x12d   :  { %v450_v31 = vpop.eup %449  ;;  %v194_v32 = vadd.f32 1.0, %v448_v30 }
 0x12e   :  { %v195_v34 = vadd.f32 1.0, %v450_v31 }
 0x12f   :  { %v198_v40 = vmul.f32 %v194_v32, %v182_v35 }
 0x130   :  { %v452_v36 = vpop.eup %451  ;;  %v199_v37 = vmul.f32 %v195_v34, %v183_v33 }
 0x131   :  { %v454_v38 = vpop.eup %453  ;;  %v196_v39 = vadd.f32 1.0, %v452_v36 }
 0x132   :  { %v197_v42 = vadd.f32 1.0, %v454_v38  ;;  %300 = vmatprep.mubr.f32.mxu1 %v199_v37 }
 0x133   :  { %301 = vmatmul.mubr.f32.vlgmr.msra.gmra.mrb[0].mxu1 %v198_v40  ;;  %v200_v45 = vmul.f32 %v196_v39, %v184_v43 }
 0x134   :  { %v201_v44 = vmul.f32 %v197_v42, %v185_v41 }
 0x136   :  { %305 = vmatprep.mubr.f32.mxu1 %v201_v44 }
 0x137   :  { %306 = vmatmul.mubr.f32.gmra.mrb[2].mxu1 %v200_v45 }
 0x206   :  { %v384_v46 = vpop.f32.mrb[0].mxu1 }
 0x207   :  { %v385_v47 = vpop.f32.mrb[1].mxu1 }
 0x208   :  { %v386_v49 = vadd.f32 %v385_v47, %v384_v46 }
 0x20a   :  { %v327_v50 = vadd.f32 %v386_v49, %v351_v48  ;;  %v387_v51 = vpop.f32.mrb[2].mxu1 }
 0x20b   :  { %v388_v52 = vpop.f32.mrb[3].mxu1 }
 0x20c   :  { %329 = vst [vmem:[#allocation9] sm:$0xff] %v327_v50  ;;  %v389_v53 = vadd.f32 %v388_v52, %v387_v51 }
 0x20e   :  { %v328_v54 = vadd.f32 %v389_v53, %v351_v48 }
 0x210   :  { %330 = vst [vmem:[#allocation9 + $0x8] sm:$0xff] %v328_v54 }
 0x211   :  { %532 = shalt.err (!%p529_p0)
}
 0x212   :  { %s533_s12 = scalar_lea.hbm %s656_s5, 256 }
 0x213   :  { %p534_p1 = scmp.ne.s32.totalorder %s656_s5, %s533_s12  ;;  %p537_p2 = scmp.lt.u32.totalorder %s533_s12, %s656_s5 }
 0x215   :  { %p539_p3 = pnand %p537_p2, %p534_p1 }
 0x217   :  { %542 = shalt.err (!%p539_p3)
}
 0x218   :  { %342 = dma.vmem_to_hbm [thread:$0]  %s337_s9, 256, %s656_s5, [#allocation5], %s553_s1, %s553_s1, %s554_s17  }
 0x219   :  { %547 = dma.done.wait [#allocation5], 256  }
 0x21a   :  { %548 = vsyncadd [#allocation5], 4294967040 }
 0x21b   :  { %346 = vsyncpa [#allocation4], 1 }
 0x21c   :  { %347 = vsyncpa [#allocation7], 1 }
 0x21d   :  { %348 = vsyncpa [#allocation5], 1 }

</bundles_post_ra>
